<compile_context>
chip_gen: v6e
topology: v6e:2x2x1
jax: 0.10.0
libtpu: 0.0.40
codegen_flags: <defaults>
</compile_context>

<pallas_src>
import functools
import math

import jax
import jax.numpy as jnp
from jax import lax
from jax.scipy.stats import norm
from jax.experimental import pallas as pl
from jax.experimental.pallas import tpu as pltpu


# ----------------------------------------------------------------------------
# Fused Pallas kernel: gating + all packed experts in one invocation
# ----------------------------------------------------------------------------
def moe_fused_kernel(x_ref, w_in_ref, whh_ref, brnn_ref,
                     w1_ref, b1_ref, w2_ref, b2_ref,
                     out_ref, *, seq_len, b_pad, eh, e2):
    # x_ref   : (S*B_pad, D)   time-major input slab (batch padded to 8 rows)
    # w_in_ref: (D, EH+2E)     [packed W_ih^T | (w_gate|w_noise)/S]
    # whh_ref : (EH, EH)       block-diagonal of per-expert W_hh^T
    # brnn_ref: (1, EH)        (b_ih + b_hh) packed
    # w1_ref  : (EH, EF)       block-diagonal of per-expert fc1 W^T
    # b1_ref  : (1, EF)
    # w2_ref  : (EF, E)        per-expert fc2 weight columns
    # b2_ref  : (1, E)
    # out_ref : (B_pad, EH+2E+E) merged output slab:
    #             cols [eh, eh+e2)   -> [clean_logits | raw_noise_stddev]
    #             cols [eh+e2, end)  -> per-expert scalar outputs

    # ONE MXU pass for all timesteps' input projection AND the gating columns.
    proj = jnp.dot(x_ref[...], w_in_ref[...],
                   preferred_element_type=jnp.float32)          # (S*B_pad, EH+2E)

    # Sequence sum of the projection rows; the last 2E lanes are the gating
    # logits (gating weights were pre-scaled by 1/S, so sum == mean-pool @ w).
    # Sublane slices at multiples of 8 are aligned -> no relayout.
    row_sum = proj[0:b_pad, :]
    for t in range(1, seq_len):
        row_sum = row_sum + proj[t * b_pad:(t + 1) * b_pad, :]

    # RNN biases: single VPU add over the whole slab.
    u_all = proj[:, 0:eh] + brnn_ref[...]                       # (S*B_pad, EH)

    # Serial recurrence (fully unrolled): only h @ W_hh stays on the chain.
    whh = whh_ref[...]
    h = jnp.tanh(u_all[0:b_pad, :])                             # h_0 = 0
    for t in range(1, seq_len):
        h = jnp.tanh(u_all[t * b_pad:(t + 1) * b_pad, :]
                     + jnp.dot(h, whh, preferred_element_type=jnp.float32))

    z = jnp.tanh(jnp.dot(h, w1_ref[...], preferred_element_type=jnp.float32)
                 + b1_ref[...])                                 # (B_pad, EF)
    eout = (jnp.dot(z, w2_ref[...], preferred_element_type=jnp.float32)
            + b2_ref[...])                                      # (B_pad, E)

    # Single merged output slab (one output DMA). Wrapper slices the columns.
    out_ref[:, 0:eh + e2] = row_sum
    out_ref[:, eh + e2:] = eout


def moe_fused_pallas(x, p):
    """One fused Pallas call: returns (gate_logits [B,2E], expert_out [B,E])."""
    B, S, D = x.shape
    E = p["b2_pack"].shape[1]
    EH = p["whh_blk"].shape[0]
    EF = p["w1_blk"].shape[1]
    E2 = 2 * E
    OUTW = EH + E2 + E
    B_pad = ((B + 7) // 8) * 8          # pad batch to sublane granularity

    # Host/XLA-side prep: pad batch, go time-major, flatten to one (S*B_pad, D)
    # slab so the full input projection is a single lane-packed MXU pass.
    x_pad = jnp.pad(x, ((0, B_pad - B), (0, 0), (0, 0)))
    x_slab = jnp.transpose(x_pad, (1, 0, 2)).reshape(S * B_pad, D)

    flops = 2 * (S * B_pad * D * (EH + E2) + (S - 1) * B_pad * EH * EH
                 + B_pad * EH * EF + B_pad * EF * E)
    transcendentals = S * B_pad * EH + B_pad * EF
    bytes_accessed = 4 * (x_slab.size + p["w_in_pack"].size + p["whh_blk"].size
                          + p["b_rnn"].size + p["w1_blk"].size + p["b1_pack"].size
                          + p["w2_blk"].size + p["b2_pack"].size + B_pad * OUTW)

    vmem_spec = pl.BlockSpec(memory_space=pltpu.MemorySpace.VMEM)
    out = pl.pallas_call(
        functools.partial(moe_fused_kernel, seq_len=S, b_pad=B_pad, eh=EH, e2=E2),
        out_shape=jax.ShapeDtypeStruct((B_pad, OUTW), jnp.float32),
        in_specs=[vmem_spec] * 8,
        out_specs=vmem_spec,
        cost_estimate=pl.CostEstimate(flops=flops,
                                      transcendentals=transcendentals,
                                      bytes_accessed=bytes_accessed),
    )(x_slab, p["w_in_pack"], p["whh_blk"], p["b_rnn"],
      p["w1_blk"], p["b1_pack"], p["w2_blk"], p["b2_pack"])

    gate_logits = out[:B, EH:EH + E2]   # [clean_logits | raw_noise_stddev]
    expert_out = out[:B, EH + E2:]      # (B, E)
    return gate_logits, expert_out


# ----------------------------------------------------------------------------
# MoE forward (glue reproducing the PyTorch semantics; fused into one jit)
# ----------------------------------------------------------------------------
def cv_squared(v):
    eps = 1e-10
    if v.shape[0] == 1:
        return jnp.zeros((), v.dtype)
    v = v.astype(jnp.float32)
    return jnp.var(v, ddof=1) / (jnp.mean(v) ** 2 + eps)


def _prob_in_top_k(clean, noisy, noise_stddev, noisy_top_values, k):
    bsz, _ = clean.shape
    m = noisy_top_values.shape[1]
    top_flat = noisy_top_values.reshape(-1)
    k_min = min(k, m - 1)
    pos_in = jnp.arange(bsz) * m + k_min
    thr_in = top_flat[pos_in][:, None]
    is_in = noisy > thr_in
    pos_out = jnp.maximum(pos_in - 1, 0)      # == torch.clamp(pos_in-1, min=0)
    thr_out = top_flat[pos_out][:, None]
    std = noise_stddev + 1e-10
    prob_if_in = norm.cdf((clean - thr_in) / std)
    prob_if_out = norm.cdf((clean - thr_out) / std)
    return jnp.where(is_in, prob_if_in, prob_if_out)


def moe_forward(params, x, noise_key, *, k, training=True, noisy_gating=True,
                loss_coef=0.01, noise_epsilon=0.01):
    B, S, D = x.shape
    E = params["b2_pack"].shape[1]

    # --- one fused Pallas call: gating logits + all expert outputs ---
    gate_logits, all_out = moe_fused_pallas(x, params)    # (B, 2E), (B, E)
    clean_logits = gate_logits[:, :E]
    raw_noise_stddev = gate_logits[:, E:]

    if noisy_gating and training:
        noise_stddev = jax.nn.softplus(raw_noise_stddev) + noise_epsilon
        noisy_logits = clean_logits + jax.random.normal(
            noise_key, clean_logits.shape, jnp.float32) * noise_stddev
        logits = noisy_logits
    else:
        noise_stddev = None
        noisy_logits = None
        logits = clean_logits

    m = min(k + 1, E)
    top_logits, top_indices = lax.top_k(logits, m)
    top_k_logits = top_logits[:, :k]
    top_k_indices = top_indices[:, :k]
    top_k_gates = jax.nn.softmax(top_k_logits, axis=1)
    gates = jnp.zeros_like(logits).at[
        jnp.arange(B)[:, None], top_k_indices].set(top_k_gates)

    if noisy_gating and k < E and training:
        load = _prob_in_top_k(clean_logits, noisy_logits, noise_stddev,
                              top_logits, k).sum(0)
    else:
        load = (gates > 0).sum(0)

    importance = gates.sum(0)
    loss = (cv_squared(importance) + cv_squared(load)) * loss_coef

    # --- SparseDispatcher (softmax gates > 0 => exactly k nonzeros per row) ---
    batch_idx_rm = jnp.repeat(jnp.arange(B), k)                  # row-major nonzero
    expert_idx_rm = jnp.sort(top_k_indices, axis=1).reshape(-1)
    order = jnp.argsort(expert_idx_rm, stable=True)              # sort by expert
    expert_index = expert_idx_rm[order]
    batch_index = batch_idx_rm[order]
    nonzero_gates = gates[batch_index, expert_index][:, None]    # [N, 1]

    # gather dispatched rows from the dense (B, E) expert output
    stitched = all_out[batch_index, expert_index][:, None]       # [N, 1]

    # combine (faithful to the PyTorch broadcast: [N,1]*[N,1,1] -> [N,N,1])
    stitched = stitched * nonzero_gates.reshape(-1, 1, 1)        # [N, N, 1]
    y = jnp.zeros((B,) + stitched.shape[1:], jnp.float32).at[batch_index].add(stitched)
    return y, loss


# Single fused jit region: kernel + all gating/dispatch glue dispatch as one program.
moe_forward_jit = jax.jit(moe_forward,
                          static_argnames=("k", "training", "noisy_gating"))


# ----------------------------------------------------------------------------
# Deterministic parameter init + host-side expert packing
# ----------------------------------------------------------------------------
def init_moe_params(key, D, H, E, S):
    F = 20  # fc1 width
    ks = jax.random.split(key, 10)
    u = lambda kk, shape, b: jax.random.uniform(kk, shape, jnp.float32, -b, b)
    bnd_h = 1.0 / math.sqrt(H)
    bnd_f = 1.0 / math.sqrt(F)

    wih = u(ks[0], (E, H, D), 0.1)       # nn.RNN weight_ih_l0, uniform(-0.1, 0.1)
    whh = u(ks[1], (E, H, H), 0.1)       # nn.RNN weight_hh_l0, uniform(-0.1, 0.1)
    bih = u(ks[2], (E, H), bnd_h)        # nn.RNN bias_ih_l0 (default init)
    bhh = u(ks[3], (E, H), bnd_h)        # nn.RNN bias_hh_l0
    w1 = u(ks[4], (E, F, H), bnd_h)      # fc1: Linear(H, 20)
    b1 = u(ks[5], (E, F), bnd_h)
    w2 = u(ks[6], (E, 1, F), bnd_f)      # fc2: Linear(20, 1)
    b2 = u(ks[7], (E, 1), bnd_f)
    w_gate = jax.random.normal(ks[8], (D, E), jnp.float32)
    w_noise = jax.random.normal(ks[9], (D, E), jnp.float32)

    # --- pack all experts along the lane axis (one-time, outside the kernel) ---
    wih_pack = jnp.transpose(wih, (2, 0, 1)).reshape(D, E * H)    # (D, E*H)
    # Fold the gating weights (pre-scaled by 1/S -> mean-pool) as extra columns.
    w_gn = jnp.concatenate([w_gate, w_noise], axis=1) * (1.0 / S)  # (D, 2E)
    w_in_pack = jnp.concatenate([wih_pack, w_gn], axis=1)          # (D, E*H + 2E)

    whh_blk = jnp.zeros((E * H, E * H), jnp.float32)
    w1_blk = jnp.zeros((E * H, E * F), jnp.float32)
    w2_blk = jnp.zeros((E * F, E), jnp.float32)
    for e in range(E):
        whh_blk = whh_blk.at[e * H:(e + 1) * H, e * H:(e + 1) * H].set(whh[e].T)
        w1_blk = w1_blk.at[e * H:(e + 1) * H, e * F:(e + 1) * F].set(w1[e].T)
        w2_blk = w2_blk.at[e * F:(e + 1) * F, e].set(w2[e, 0, :])

    packed = dict(
        w_in_pack=w_in_pack, whh_blk=whh_blk,
        b_rnn=(bih + bhh).reshape(1, E * H),
        w1_blk=w1_blk, b1_pack=b1.reshape(1, E * F),
        w2_blk=w2_blk, b2_pack=b2.reshape(1, E),
    )
    raw = dict(wih=wih, whh=whh, bih=bih, bhh=bhh, w1=w1, b1=b1, w2=w2, b2=b2,
               w_gate=w_gate, w_noise=w_noise)
    return packed, raw


def moe_fused_reference(x, raw):
    """Pure-JAX (unpacked) reference of the fused kernel outputs."""
    B, S, D = x.shape
    E, H, _ = raw["wih"].shape
    x_mean = x.mean(axis=1)
    gate_logits = jnp.concatenate(
        [x_mean @ raw["w_gate"], x_mean @ raw["w_noise"]], axis=1)     # (B, 2E)
    outs = []
    for e in range(E):
        h = jnp.zeros((B, H), jnp.float32)
        for t in range(S):
            h = jnp.tanh(x[:, t] @ raw["wih"][e].T + raw["bih"][e]
                         + h @ raw["whh"][e].T + raw["bhh"][e])
        z = jnp.tanh(h @ raw["w1"][e].T + raw["b1"][e])
        outs.append(z @ raw["w2"][e].T + raw["b2"][e])                 # (B, 1)
    return gate_logits, jnp.concatenate(outs, axis=1)                  # (B, E)


if __name__ == "__main__":
    # MoE(input_size=8, output_size=1, num_experts=6, hidden_size=16,
    #     seq_len=5, noisy_gating=True, k=3); batch=4.
    B, S, D, H, E, K = 4, 5, 8, 16, 6, 3

    key = jax.random.PRNGKey(0)
    kx, kp, kn = jax.random.split(key, 3)
    x = jax.random.normal(kx, (B, S, D), jnp.float32)
    params, raw = init_moe_params(kp, D, H, E, S)

    # Validate the fused kernel (gating + packed experts) against unpacked JAX math.
    g_k, o_k = moe_fused_pallas(x, params)
    g_r, o_r = moe_fused_reference(x, raw)
    jax.block_until_ready((g_k, o_k, g_r, o_r))
    assert bool(jnp.allclose(g_k, g_r, atol=5e-3, rtol=5e-3)), "gating mismatch"
    assert bool(jnp.allclose(o_k, o_r, atol=5e-3, rtol=5e-3)), "expert mismatch"

    # Full forward (single jit region: pallas kernel + gating/dispatch glue).
    y, loss = moe_forward_jit(params, x, kn, k=K, training=True, noisy_gating=True)
    jax.block_until_ready((y, loss))

    assert y.shape == (B, B * K, 1), y.shape       # matches PyTorch combine() output
    assert loss.shape == (), loss.shape
    assert bool(jnp.all(jnp.isfinite(y))) and bool(jnp.isfinite(loss))
    print("KERNEL_OK")
</pallas_src>

<mosaic_0001>
module attributes {stable_mosaic.version = 11 : i64} {
  func.func @moe_fused_kernel(%arg0: memref<40x8xf32, #tpu.memory_space<vmem>>, %arg1: memref<8x108xf32, #tpu.memory_space<vmem>>, %arg2: memref<96x96xf32, #tpu.memory_space<vmem>>, %arg3: memref<1x96xf32, #tpu.memory_space<vmem>>, %arg4: memref<96x120xf32, #tpu.memory_space<vmem>>, %arg5: memref<1x120xf32, #tpu.memory_space<vmem>>, %arg6: memref<120x6xf32, #tpu.memory_space<vmem>>, %arg7: memref<1x6xf32, #tpu.memory_space<vmem>>, %arg8: memref<8x114xf32, #tpu.memory_space<vmem>>) attributes {dimension_semantics = [], scalar_prefetch = 0 : i64, scratch_operands = 0 : i64, tpu.core_type = #tpu.core_type<tc>} {
    %c0 = arith.constant 0 : index
    %c0_0 = arith.constant 0 : index
    %0 = vector.load %arg0[%c0, %c0_0] : memref<40x8xf32, #tpu.memory_space<vmem>>, vector<40x8xf32>
    %c0_1 = arith.constant 0 : index
    %c0_2 = arith.constant 0 : index
    %1 = vector.load %arg1[%c0_1, %c0_2] : memref<8x108xf32, #tpu.memory_space<vmem>>, vector<8x108xf32>
    %cst = arith.constant dense<0.000000e+00> : vector<40x108xf32>
    %2 = tpu.matmul %0, %1, %cst {dimension_numbers = #tpu.dot_dimension_numbers<[1], [0], [0], [1], [0, 0, 1, 1], [], []>} : vector<40x8xf32>, vector<8x108xf32>, vector<40x108xf32> -> vector<40x108xf32>
    %3 = vector.extract_strided_slice %2 {offsets = [0, 0], sizes = [8, 108], strides = [1, 1]} : vector<40x108xf32> to vector<8x108xf32>
    %4 = vector.extract_strided_slice %2 {offsets = [8, 0], sizes = [8, 108], strides = [1, 1]} : vector<40x108xf32> to vector<8x108xf32>
    %5 = arith.addf %3, %4 : vector<8x108xf32>
    %6 = vector.extract_strided_slice %2 {offsets = [16, 0], sizes = [8, 108], strides = [1, 1]} : vector<40x108xf32> to vector<8x108xf32>
    %7 = arith.addf %5, %6 : vector<8x108xf32>
    %8 = vector.extract_strided_slice %2 {offsets = [24, 0], sizes = [8, 108], strides = [1, 1]} : vector<40x108xf32> to vector<8x108xf32>
    %9 = arith.addf %7, %8 : vector<8x108xf32>
    %10 = vector.extract_strided_slice %2 {offsets = [32, 0], sizes = [8, 108], strides = [1, 1]} : vector<40x108xf32> to vector<8x108xf32>
    %11 = arith.addf %9, %10 : vector<8x108xf32>
    %12 = vector.extract_strided_slice %2 {offsets = [0, 0], sizes = [40, 96], strides = [1, 1]} : vector<40x108xf32> to vector<40x96xf32>
    %c0_3 = arith.constant 0 : index
    %c0_4 = arith.constant 0 : index
    %13 = vector.load %arg3[%c0_3, %c0_4] : memref<1x96xf32, #tpu.memory_space<vmem>>, vector<1x96xf32>
    %14 = vector.broadcast %13 : vector<1x96xf32> to vector<40x96xf32>
    %15 = arith.addf %12, %14 : vector<40x96xf32>
    %c0_5 = arith.constant 0 : index
    %c0_6 = arith.constant 0 : index
    %16 = vector.load %arg2[%c0_5, %c0_6] : memref<96x96xf32, #tpu.memory_space<vmem>>, vector<96x96xf32>
    %17 = vector.extract_strided_slice %15 {offsets = [0, 0], sizes = [8, 96], strides = [1, 1]} : vector<40x96xf32> to vector<8x96xf32>
    %18 = math.tanh %17 : vector<8x96xf32>
    %19 = vector.extract_strided_slice %15 {offsets = [8, 0], sizes = [8, 96], strides = [1, 1]} : vector<40x96xf32> to vector<8x96xf32>
    %cst_7 = arith.constant dense<0.000000e+00> : vector<8x96xf32>
    %20 = tpu.matmul %18, %16, %cst_7 {dimension_numbers = #tpu.dot_dimension_numbers<[1], [0], [0], [1], [0, 0, 1, 1], [], []>} : vector<8x96xf32>, vector<96x96xf32>, vector<8x96xf32> -> vector<8x96xf32>
    %21 = arith.addf %19, %20 : vector<8x96xf32>
    %22 = math.tanh %21 : vector<8x96xf32>
    %23 = vector.extract_strided_slice %15 {offsets = [16, 0], sizes = [8, 96], strides = [1, 1]} : vector<40x96xf32> to vector<8x96xf32>
    %cst_8 = arith.constant dense<0.000000e+00> : vector<8x96xf32>
    %24 = tpu.matmul %22, %16, %cst_8 {dimension_numbers = #tpu.dot_dimension_numbers<[1], [0], [0], [1], [0, 0, 1, 1], [], []>} : vector<8x96xf32>, vector<96x96xf32>, vector<8x96xf32> -> vector<8x96xf32>
    %25 = arith.addf %23, %24 : vector<8x96xf32>
    %26 = math.tanh %25 : vector<8x96xf32>
    %27 = vector.extract_strided_slice %15 {offsets = [24, 0], sizes = [8, 96], strides = [1, 1]} : vector<40x96xf32> to vector<8x96xf32>
    %cst_9 = arith.constant dense<0.000000e+00> : vector<8x96xf32>
    %28 = tpu.matmul %26, %16, %cst_9 {dimension_numbers = #tpu.dot_dimension_numbers<[1], [0], [0], [1], [0, 0, 1, 1], [], []>} : vector<8x96xf32>, vector<96x96xf32>, vector<8x96xf32> -> vector<8x96xf32>
    %29 = arith.addf %27, %28 : vector<8x96xf32>
    %30 = math.tanh %29 : vector<8x96xf32>
    %31 = vector.extract_strided_slice %15 {offsets = [32, 0], sizes = [8, 96], strides = [1, 1]} : vector<40x96xf32> to vector<8x96xf32>
    %cst_10 = arith.constant dense<0.000000e+00> : vector<8x96xf32>
    %32 = tpu.matmul %30, %16, %cst_10 {dimension_numbers = #tpu.dot_dimension_numbers<[1], [0], [0], [1], [0, 0, 1, 1], [], []>} : vector<8x96xf32>, vector<96x96xf32>, vector<8x96xf32> -> vector<8x96xf32>
    %33 = arith.addf %31, %32 : vector<8x96xf32>
    %34 = math.tanh %33 : vector<8x96xf32>
    %c0_11 = arith.constant 0 : index
    %c0_12 = arith.constant 0 : index
    %35 = vector.load %arg4[%c0_11, %c0_12] : memref<96x120xf32, #tpu.memory_space<vmem>>, vector<96x120xf32>
    %cst_13 = arith.constant dense<0.000000e+00> : vector<8x120xf32>
    %36 = tpu.matmul %34, %35, %cst_13 {dimension_numbers = #tpu.dot_dimension_numbers<[1], [0], [0], [1], [0, 0, 1, 1], [], []>} : vector<8x96xf32>, vector<96x120xf32>, vector<8x120xf32> -> vector<8x120xf32>
    %c0_14 = arith.constant 0 : index
    %c0_15 = arith.constant 0 : index
    %37 = vector.load %arg5[%c0_14, %c0_15] : memref<1x120xf32, #tpu.memory_space<vmem>>, vector<1x120xf32>
    %38 = vector.broadcast %37 : vector<1x120xf32> to vector<8x120xf32>
    %39 = arith.addf %36, %38 : vector<8x120xf32>
    %40 = math.tanh %39 : vector<8x120xf32>
    %c0_16 = arith.constant 0 : index
    %c0_17 = arith.constant 0 : index
    %41 = vector.load %arg6[%c0_16, %c0_17] : memref<120x6xf32, #tpu.memory_space<vmem>>, vector<120x6xf32>
    %cst_18 = arith.constant dense<0.000000e+00> : vector<8x6xf32>
    %42 = tpu.matmul %40, %41, %cst_18 {dimension_numbers = #tpu.dot_dimension_numbers<[1], [0], [0], [1], [0, 0, 1, 1], [], []>} : vector<8x120xf32>, vector<120x6xf32>, vector<8x6xf32> -> vector<8x6xf32>
    %c0_19 = arith.constant 0 : index
    %c0_20 = arith.constant 0 : index
    %43 = vector.load %arg7[%c0_19, %c0_20] : memref<1x6xf32, #tpu.memory_space<vmem>>, vector<1x6xf32>
    %44 = vector.broadcast %43 : vector<1x6xf32> to vector<8x6xf32>
    %45 = arith.addf %42, %44 : vector<8x6xf32>
    %c0_21 = arith.constant 0 : index
    %c0_22 = arith.constant 0 : index
    %46 = vector.load %arg8[%c0_21, %c0_22] : memref<8x114xf32, #tpu.memory_space<vmem>>, vector<8x108xf32>
    tpu.vector_store %arg8[%c0_21, %c0_22], %11 {strides = array<i32>} : memref<8x114xf32, #tpu.memory_space<vmem>>, vector<8x108xf32>,
    %c0_23 = arith.constant 0 : index
    %c108 = arith.constant 108 : index
    %47 = vector.load %arg8[%c0_23, %c108] : memref<8x114xf32, #tpu.memory_space<vmem>>, vector<8x6xf32>
    tpu.vector_store %arg8[%c0_23, %c108], %45 {strides = array<i32>} : memref<8x114xf32, #tpu.memory_space<vmem>>, vector<8x6xf32>,
    return
  }
}

</mosaic_0001>

<bundles_post_ra>
// kernel: tpu_custom_call.1
= control target key start
LH: loop header
LB: loop body
LE: loop exit
PB: predicated region body
PF: predicated region fallthrough
CT: control target
= control target key end

     0   :  { %13 = vsyncpa [#allocation3], 0  ;;  %s1402_s0 = inlined_call_operand.vmem [shape: f32[40,8], index: 0, kind: input, shape index: {}]   ;;  %s1403_s1 = inlined_call_operand.vmem [shape: f32[8,108], index: 1, kind: input, shape index: {}]   ;;  %s1404_s2 = inlined_call_operand.vmem [shape: f32[96,96], index: 2, kind: input, shape index: {}]   ;;  %s1405_s3 = inlined_call_operand.vmem [shape: f32[1,96], index: 3, kind: input, shape index: {}]   ;;  %s1406_s4 = inlined_call_operand.hbm [shape: f32[96,120], index: 4, kind: input, shape index: {}]   ;;  %s1407_s5 = inlined_call_operand.vmem [shape: f32[1,120], index: 5, kind: input, shape index: {}]   ;;  %s1408_s6 = inlined_call_operand.vmem [shape: f32[120,6], index: 6, kind: input, shape index: {}]   ;;  %s1409_s7 = inlined_call_operand.vmem [shape: f32[1,6], index: 7, kind: input, shape index: {}]   ;;  %s1410_s8 = inlined_call_operand.hbm [shape: f32[8,114], index: 8, kind: output, shape index: {}]  }
   0x1   :  { %14 = vsyncpa [#allocation4], 0  ;;  %s1047_s27 = smov [#allocation2]  }
   0x2   :  { %s28_s28 = sshll.u32 %s1047_s27, 4  ;;  %s29_s28 = int_to_ptr.vmem [resolvable:$true] %s28_s28 }
   0x3   :  { %s1011_s29 = scalar_lea.vmem %s29_s28, 1536  ;;  %p1016_p1 = scmp.lt.s32.totalorder %s29_s28, %s29_s28 }
   0x4   :  { %p1012_p0 = scmp.ne.s32.totalorder %s29_s28, %s1011_s29  ;;  %p1017_p2 = scmp.lt.s32.totalorder %s1011_s29, %s1011_s29 }
   0x6   :  { %p1018_p3 = por %p1017_p2, %p1016_p1 }
   0x8   :  { %p1019_p4 = pnand %p1018_p3, %p1012_p0 }
   0xa   :  { %1022 = shalt.err (!%p1019_p4)
}
   0xb   :  { %s1048_s30 = smov 128   ;;  %s1049_s9 = smov 8  }
   0xc   :  { %34 = dma.hbm_to_vmem [thread:$0]  %s1406_s4, 1536, %s29_s28, [#allocation3], %s1048_s30, %s1048_s30, %s1049_s9  }
   0xd   :  { %1043 = dma.done.wait [#allocation3], 1536  }
   0xe   :  { %1044 = vsyncadd [#allocation3], 4294965760  ;;  %v1050_v0 = vmov 0.0   ;;  %vm1051_vm0 = vmmov 0   ;;  %vm50_vm1 = vcmask 64512   ;;  %v49_v1 = vld [vmem:[%s1403_s1] sm:$0xff] }
   0xf   :  { %799 = vmatprep.subr.mxu1 %v1050_v0  ;;  %801 = vmatprep.mubr.msk.f32.mxu1 %vm1051_vm0, %v1050_v0  ;;  %v44_v2 = vld [vmem:[%s1402_s0] sm:$0xff]  ;;  %v1119_v3 = vld [vmem:[%s1404_s2 + $0x58] sm:$0xff]  ;;  %v1124_v4 = vld [vmem:[%s1404_s2 + $0x50] sm:$0xff]  ;;  %vm185_vm2 = vcmask 785408   ;;  %vm675_vm3 = vcmask 883712   ;;  %vm601_vm4 = vcmask 982016  }
  0x10   :  { %843 = vmatprep.subr.mxu0 %v1050_v0  ;;  %867 = vmatprep.mubr.msk.f32.mxu0 %vm1051_vm0, %v1050_v0  ;;  %v45_v5 = vld [vmem:[%s1402_s0 + $0x8] sm:$0xff]  ;;  %v46_v7 = vld [vmem:[%s1402_s0 + $0x10] sm:$0xff]  ;;  %v47_v8 = vld [vmem:[%s1402_s0 + $0x18] sm:$0xff]  ;;  %s1053_s28 = smov [#allocation5]   ;;  %vm681_vm5 = vcmask 933728  }
  0x11   :  { %800 = vmatpush3.msra.mxu1 %v49_v1  ;;  %v1136_v6 = vld [vmem:[%s1404_s2 + $0x48] sm:$0xff]  ;;  %844 = vmatpush3.msra.mxu0 %v1119_v3  ;;  %v48_v9 = vld [vmem:[%s1402_s0 + $0x20] sm:$0xff]  ;;  %v1180_v11 = vld [vmem:[%s1404_s2 + $0x38] sm:$0xff]  ;;  %s689_s29 = sshll.u32 %s1053_s28, 4  ;;  %s690_s29 = int_to_ptr.vmem [resolvable:$true] %s689_s29 }
  0x12   :  { %802 = vmatmul.mubr.msk.f32.vlgmr.msra.gmra.mxu1 %vm50_vm1, %v44_v2  ;;  %816 = vmatprep.subr.mxu1 %v1050_v0  ;;  %v1172_v10 = vld [vmem:[%s1404_s2 + $0x40] sm:$0xff]  ;;  %v1189_v12 = vld [vmem:[%s1404_s2 + $0x30] sm:$0xff]  ;;  %v1198_v13 = vld [vmem:[%s1404_s2 + $0x28] sm:$0xff]  ;;  %p1028_p6 = scmp.lt.s32.totalorder %s690_s29, %s690_s29 }
  0x13   :  { %804 = vmatprep.mubr.msk.f32.mxu1 %vm1051_vm0, %v1050_v0  ;;  %817 = vmatpush3.msra.mxu1 %v1119_v3  ;;  %v1207_v14 = vld [vmem:[%s1404_s2 + $0x20] sm:$0xff]  ;;  %v1216_v15 = vld [vmem:[%s1404_s2 + $0x18] sm:$0xff]  ;;  %v1225_v16 = vld [vmem:[%s1404_s2 + $0x10] sm:$0xff] }
  0x14   :  { %818 = vmatprep.subr.mxu1 %v1050_v0  ;;  %845 = vmatprep.subr.mxu0 %v1050_v0  ;;  %v1234_v17 = vld [vmem:[%s1404_s2 + $0x8] sm:$0xff]  ;;  %v1243_v18 = vld [vmem:[%s1404_s2] sm:$0xff]  ;;  %v497_v48 = vld [vmem:[#allocation2 + $0x58] sm:$0xff] }
  0x15   :  { %819 = vmatpush3.msra.mxu1 %v1124_v4  ;;  %846 = vmatpush3.msra.mxu0 %v1124_v4  ;;  %v703_v19 = vld [vmem:[%s1405_s3] ss:$0 sm:$0xff]  ;;  %v496_v49 = vld [vmem:[#allocation2 + $0x50] sm:$0xff]  ;;  %v495_v50 = vld [vmem:[#allocation2 + $0x48] sm:$0xff] }
  0x16   :  { %805 = vmatmul.mubr.msk.f32.gmra.mxu1 %vm50_vm1, %v45_v5  ;;  %820 = vmatprep.subr.mxu1 %v1050_v0  ;;  %v494_v55 = vld [vmem:[#allocation2 + $0x40] sm:$0xff]  ;;  %v493_v56 = vld [vmem:[#allocation2 + $0x38] sm:$0xff]  ;;  %v492_v57 = vld [vmem:[#allocation2 + $0x30] sm:$0xff] }
  0x17   :  { %807 = vmatprep.mubr.msk.f32.mxu1 %vm1051_vm0, %v1050_v0  ;;  %821 = vmatpush3.msra.mxu1 %v1136_v6  ;;  %v491_v58 = vld [vmem:[#allocation2 + $0x28] sm:$0xff]  ;;  %v490_v59 = vld [vmem:[#allocation2 + $0x20] sm:$0xff]  ;;  %v489_v60 = vld [vmem:[#allocation2 + $0x18] sm:$0xff] }
  0x18   :  { %822 = vmatprep.subr.mxu1 %v1050_v0  ;;  %847 = vmatprep.subr.mxu0 %v1050_v0  ;;  %v488_v61 = vld [vmem:[#allocation2 + $0x10] sm:$0xff]  ;;  %v487_v62 = vld [vmem:[#allocation2 + $0x8] sm:$0xff]  ;;  %v486_v63 = vld [vmem:[#allocation2] sm:$0xff] }
  0x19   :  { %848 = vmatpush3.msra.mxu0 %v1136_v6  ;;  %823 = vmatpush3.msra.mxu1 %v1172_v10  ;;  %v593_v1 = vld [vmem:[%s1408_s6 + $0x70] sm:$0xff]  ;;  %v592_v2 = vld [vmem:[%s1408_s6 + $0x68] sm:$0xff] }
  0x1a   :  { %808 = vmatmul.mubr.msk.f32.gmra.mxu1 %vm50_vm1, %v46_v7  ;;  %849 = vmatprep.subr.mxu0 %v1050_v0  ;;  %v589_v5 = vld [vmem:[%s1408_s6 + $0x50] sm:$0xff] }
  0x1b   :  { %810 = vmatprep.mubr.msk.f32.mxu1 %vm1051_vm0, %v1050_v0  ;;  %850 = vmatpush3.msra.mxu0 %v1172_v10 }
  0x1c   :  { %824 = vmatprep.subr.mxu1 %v1050_v0  ;;  %851 = vmatprep.subr.mxu0 %v1050_v0 }
  0x1d   :  { %825 = vmatpush3.msra.mxu1 %v1180_v11  ;;  %852 = vmatpush3.msra.mxu0 %v1180_v11 }
  0x1e   :  { %811 = vmatmul.mubr.msk.f32.gmra.mxu1 %vm50_vm1, %v47_v8  ;;  %826 = vmatprep.subr.mxu1 %v1050_v0 }
  0x1f   :  { %813 = vmatprep.mubr.msk.f32.mxu1 %vm1051_vm0, %v1050_v0  ;;  %853 = vmatprep.subr.mxu0 %v1050_v0 }
  0x20   :  { %827 = vmatpush3.msra.mxu1 %v1189_v12  ;;  %854 = vmatpush3.msra.mxu0 %v1189_v12 }
  0x21   :  { %828 = vmatprep.subr.mxu1 %v1050_v0  ;;  %855 = vmatprep.subr.mxu0 %v1050_v0 }
  0x22   :  { %814 = vmatmul.mubr.msk.f32.gmra.mxu1 %vm50_vm1, %v48_v9  ;;  %856 = vmatpush3.msra.mxu0 %v1198_v13 }
  0x23   :  { %840 = vmatprep.mubr.msk.f32.mxu1 %vm1051_vm0, %v1050_v0  ;;  %829 = vmatpush3.msra.mxu1 %v1198_v13 }
  0x24   :  { %830 = vmatprep.subr.mxu1 %v1050_v0  ;;  %857 = vmatprep.subr.mxu0 %v1050_v0 }
  0x25   :  { %831 = vmatpush3.msra.mxu1 %v1207_v14  ;;  %858 = vmatpush3.msra.mxu0 %v1207_v14 }
  0x26   :  { %832 = vmatprep.subr.mxu1 %v1050_v0  ;;  %859 = vmatprep.subr.mxu0 %v1050_v0 }
  0x27   :  { %833 = vmatpush3.msra.mxu1 %v1216_v15  ;;  %860 = vmatpush3.msra.mxu0 %v1216_v15 }
  0x28   :  { %834 = vmatprep.subr.mxu1 %v1050_v0  ;;  %861 = vmatprep.subr.mxu0 %v1050_v0 }
  0x29   :  { %835 = vmatpush3.msra.mxu1 %v1225_v16  ;;  %862 = vmatpush3.msra.mxu0 %v1225_v16 }
  0x2a   :  { %836 = vmatprep.subr.mxu1 %v1050_v0  ;;  %863 = vmatprep.subr.mxu0 %v1050_v0 }
  0x2b   :  { %837 = vmatpush3.msra.mxu1 %v1234_v17  ;;  %864 = vmatpush3.msra.mxu0 %v1234_v17 }
  0x2c   :  { %838 = vmatprep.subr.mxu1 %v1050_v0  ;;  %865 = vmatprep.subr.mxu0 %v1050_v0 }
  0x2d   :  { %839 = vmatpush3.msra.mxu1 %v1243_v18  ;;  %866 = vmatpush3.msra.mxu0 %v1243_v18 }
  0x2e   :  { %870 = vmatprep.subr.mxu1 %v1050_v0  ;;  %897 = vmatprep.subr.mxu0 %v1050_v0 }
  0xd2   :  { %v132_v20 = vpop.f32.mrf.mxu1 }
  0xd3   :  { %v167_v21 = vadd.f32 %v703_v19, %v132_v20 }
  0xd4   :  { %v803_v22 = vpop.f32.mrf.mxu1 }
  0xd5   :  { %991 = vtanh.f32 %v167_v21 }
  0xd6   :  { %v137_v23 = vpop.f32.mrf.mxu1 }
  0xd7   :  { %v168_v24 = vadd.f32 %v703_v19, %v137_v23  ;;  %v156_v29 = vadd.f32 %v137_v23, %v132_v20  ;;  %v708_v20 = vld [vmem:[%s1407_s5] ss:$0 sm:$0xff]  ;;  %s1023_s5 = scalar_lea.vmem %s690_s29, 128 }
  0xd8   :  { %v806_v25 = vpop.f32.mrf.mxu1  ;;  %p1024_p5 = scmp.ne.s32.totalorder %s690_s29, %s1023_s5  ;;  %p1029_p7 = scmp.lt.s32.totalorder %s1023_s5, %s1023_s5 }
  0xd9   :  { %v710_v25 = vld [vmem:[%s1409_s7] ss:$0 sm:$0xff] }
  0xda   :  { %v142_v26 = vpop.f32.mrf.mxu1  ;;  %p1030_p8 = por %p1029_p7, %p1028_p6 }
  0xdb   :  { %v1253_v27 = vadd.f32 %v703_v19, %v142_v26  ;;  %v157_v31 = vadd.f32 %v156_v29, %v142_v26 }
  0xdc   :  { %v809_v28 = vpop.f32.mrf.mxu1  ;;  %p1031_p9 = pnand %p1030_p8, %p1024_p5 }
  0xde   :  { %v147_v30 = vpop.f32.mrf.mxu1 }
  0xdf   :  { %v1255_v32 = vadd.f32 %v703_v19, %v147_v30  ;;  %v158_v34 = vadd.f32 %v157_v31, %v147_v30 }
  0xe0   :  { %v812_v33 = vpop.f32.mrf.mxu1 }
  0xe2   :  { %v992_v35 = vpop.eup %991  ;;  %v152_v36 = vpop.f32.mrf.mxu1 }
  0xe3   :  { %v159_v37 = vadd.f32 %v158_v34, %v152_v36  ;;  %v1257_v38 = vadd.f32 %v703_v19, %v152_v36  ;;  %841 = vmatmul.mubr.msk.f32.vlgmr.msra.gmra.mxu1 %vm185_vm2, %v992_v35  ;;  %v579_v19 = vld [vmem:[%s1408_s6] sm:$0xff] }
  0xe4   :  { %v815_v39 = vpop.f32.mrf.mxu1  ;;  %871 = vmatpush3.msra.mxu1 %v1119_v3  ;;  %894 = vmatprep.mubr.msk.f32.mxu1 %vm1051_vm0, %v1050_v0 }
  0xe5   :  { %872 = vmatprep.subr.mxu1 %v1050_v0  ;;  %676 = vst.msk [vmem:[#allocation5] sm:$0xff] %vm675_vm3, %v159_v37 }
  0xe6   :  { %873 = vmatpush3.msra.mxu1 %v1124_v4 }
  0xe7   :  { %874 = vmatprep.subr.mxu1 %v1050_v0 }
  0xe8   :  { %875 = vmatpush3.msra.mxu1 %v1136_v6 }
  0xe9   :  { %876 = vmatprep.subr.mxu1 %v1050_v0 }
  0xea   :  { %877 = vmatpush3.msra.mxu1 %v1172_v10 }
  0xeb   :  { %878 = vmatprep.subr.mxu1 %v1050_v0 }
  0xec   :  { %879 = vmatpush3.msra.mxu1 %v1180_v11 }
  0xed   :  { %880 = vmatprep.subr.mxu1 %v1050_v0 }
  0xee   :  { %881 = vmatpush3.msra.mxu1 %v1189_v12 }
  0xef   :  { %882 = vmatprep.subr.mxu1 %v1050_v0 }
  0xf0   :  { %883 = vmatpush3.msra.mxu1 %v1198_v13 }
  0xf1   :  { %884 = vmatprep.subr.mxu1 %v1050_v0 }
  0xf2   :  { %885 = vmatpush3.msra.mxu1 %v1207_v14 }
  0xf3   :  { %886 = vmatprep.subr.mxu1 %v1050_v0 }
  0xf4   :  { %887 = vmatpush3.msra.mxu1 %v1216_v15 }
  0xf5   :  { %888 = vmatprep.subr.mxu1 %v1050_v0 }
  0xf6   :  { %889 = vmatpush3.msra.mxu1 %v1225_v16 }
  0xf7   :  { %890 = vmatprep.subr.mxu1 %v1050_v0 }
  0xf8   :  { %891 = vmatpush3.msra.mxu1 %v1234_v17 }
  0xf9   :  { %892 = vmatprep.subr.mxu1 %v1050_v0 }
  0xfa   :  { %893 = vmatpush3.msra.mxu1 %v1243_v18 }
  0xfb   :  { %924 = vmatprep.subr.mxu1 %v1050_v0 }
 0x1a3   :  { %v255_v40 = vpop.f32.mrf.mxu1 }
 0x1a4   :  { %v259_v41 = vadd.f32 %v255_v40, %v168_v24 }
 0x1a5   :  { %v842_v42 = vpop.f32.mrf.mxu1 }
 0x1a6   :  { %993 = vtanh.f32 %v259_v41 }
 0x1b3   :  { %v994_v43 = vpop.eup %993 }
 0x1b4   :  { %868 = vmatmul.mubr.msk.f32.vlgmr.msra.gmra.mxu0 %vm185_vm2, %v994_v43 }
 0x1b5   :  { %898 = vmatpush3.msra.mxu0 %v1119_v3  ;;  %921 = vmatprep.mubr.msk.f32.mxu0 %vm1051_vm0, %v1050_v0  ;;  %v591_v3 = vld [vmem:[%s1408_s6 + $0x60] sm:$0xff] }
 0x1b6   :  { %899 = vmatprep.subr.mxu0 %v1050_v0 }
 0x1b7   :  { %900 = vmatpush3.msra.mxu0 %v1124_v4  ;;  %v590_v4 = vld [vmem:[%s1408_s6 + $0x58] sm:$0xff] }
 0x1b8   :  { %901 = vmatprep.subr.mxu0 %v1050_v0 }
 0x1b9   :  { %902 = vmatpush3.msra.mxu0 %v1136_v6  ;;  %v588_v6 = vld [vmem:[%s1408_s6 + $0x48] sm:$0xff] }
 0x1ba   :  { %903 = vmatprep.subr.mxu0 %v1050_v0 }
 0x1bb   :  { %904 = vmatpush3.msra.mxu0 %v1172_v10 }
 0x1bc   :  { %905 = vmatprep.subr.mxu0 %v1050_v0 }
 0x1bd   :  { %906 = vmatpush3.msra.mxu0 %v1180_v11  ;;  %v587_v11 = vld [vmem:[%s1408_s6 + $0x40] sm:$0xff] }
 0x1be   :  { %907 = vmatprep.subr.mxu0 %v1050_v0 }
 0x1bf   :  { %908 = vmatpush3.msra.mxu0 %v1189_v12  ;;  %v586_v12 = vld [vmem:[%s1408_s6 + $0x38] sm:$0xff] }
 0x1c0   :  { %909 = vmatprep.subr.mxu0 %v1050_v0 }
 0x1c1   :  { %910 = vmatpush3.msra.mxu0 %v1198_v13  ;;  %v585_v13 = vld [vmem:[%s1408_s6 + $0x30] sm:$0xff] }
 0x1c2   :  { %911 = vmatprep.subr.mxu0 %v1050_v0 }
 0x1c3   :  { %912 = vmatpush3.msra.mxu0 %v1207_v14  ;;  %v584_v14 = vld [vmem:[%s1408_s6 + $0x28] sm:$0xff] }
 0x1c4   :  { %913 = vmatprep.subr.mxu0 %v1050_v0 }
 0x1c5   :  { %914 = vmatpush3.msra.mxu0 %v1216_v15  ;;  %v583_v15 = vld [vmem:[%s1408_s6 + $0x20] sm:$0xff] }
 0x1c6   :  { %915 = vmatprep.subr.mxu0 %v1050_v0 }
 0x1c7   :  { %916 = vmatpush3.msra.mxu0 %v1225_v16  ;;  %v582_v16 = vld [vmem:[%s1408_s6 + $0x18] sm:$0xff] }
 0x1c8   :  { %917 = vmatprep.subr.mxu0 %v1050_v0 }
 0x1c9   :  { %918 = vmatpush3.msra.mxu0 %v1234_v17  ;;  %v581_v17 = vld [vmem:[%s1408_s6 + $0x10] sm:$0xff] }
 0x1ca   :  { %919 = vmatprep.subr.mxu0 %v1050_v0 }
 0x1cb   :  { %920 = vmatpush3.msra.mxu0 %v1243_v18  ;;  %v580_v18 = vld [vmem:[%s1408_s6 + $0x8] sm:$0xff]  ;;  %s1052_s6 = smov 108  }
 0x1cc   :  { %951 = vmatprep.subr.mxu0 %v1050_v0 }
 0x274   :  { %v330_v44 = vpop.f32.mrf.mxu0 }
 0x275   :  { %v334_v45 = vadd.f32 %v330_v44, %v1253_v27 }
 0x276   :  { %v869_v46 = vpop.f32.mrf.mxu0 }
 0x277   :  { %995 = vtanh.f32 %v334_v45 }
 0x284   :  { %v996_v47 = vpop.eup %995 }
 0x285   :  { %895 = vmatmul.mubr.msk.f32.vlgmr.msra.gmra.mxu1 %vm185_vm2, %v996_v47 }
 0x286   :  { %948 = vmatprep.mubr.msk.f32.mxu1 %vm1051_vm0, %v1050_v0  ;;  %925 = vmatpush3.msra.mxu1 %v497_v48 }
 0x287   :  { %926 = vmatprep.subr.mxu1 %v1050_v0 }
 0x288   :  { %927 = vmatpush3.msra.mxu1 %v496_v49 }
 0x289   :  { %928 = vmatprep.subr.mxu1 %v1050_v0 }
 0x28a   :  { %929 = vmatpush3.msra.mxu1 %v495_v50 }
 0x28b   :  { %930 = vmatprep.subr.mxu1 %v1050_v0 }
 0x28c   :  { %931 = vmatpush3.msra.mxu1 %v494_v55 }
 0x28d   :  { %932 = vmatprep.subr.mxu1 %v1050_v0 }
 0x28e   :  { %933 = vmatpush3.msra.mxu1 %v493_v56 }
 0x28f   :  { %934 = vmatprep.subr.mxu1 %v1050_v0 }
 0x290   :  { %935 = vmatpush3.msra.mxu1 %v492_v57 }
 0x291   :  { %936 = vmatprep.subr.mxu1 %v1050_v0 }
 0x292   :  { %937 = vmatpush3.msra.mxu1 %v491_v58 }
 0x293   :  { %938 = vmatprep.subr.mxu1 %v1050_v0 }
 0x294   :  { %939 = vmatpush3.msra.mxu1 %v490_v59 }
 0x295   :  { %940 = vmatprep.subr.mxu1 %v1050_v0 }
 0x296   :  { %941 = vmatpush3.msra.mxu1 %v489_v60 }
 0x297   :  { %942 = vmatprep.subr.mxu1 %v1050_v0 }
 0x298   :  { %943 = vmatpush3.msra.mxu1 %v488_v61 }
 0x299   :  { %944 = vmatprep.subr.mxu1 %v1050_v0 }
 0x29a   :  { %945 = vmatpush3.msra.mxu1 %v487_v62 }
 0x29b   :  { %946 = vmatprep.subr.mxu1 %v1050_v0 }
 0x29c   :  { %947 = vmatpush3.msra.mxu1 %v486_v63 }
 0x345   :  { %v405_v51 = vpop.f32.mrf.mxu1 }
 0x346   :  { %v409_v52 = vadd.f32 %v405_v51, %v1255_v32 }
 0x347   :  { %v896_v53 = vpop.f32.mrf.mxu1 }
 0x348   :  { %997 = vtanh.f32 %v409_v52 }
 0x355   :  { %v998_v54 = vpop.eup %997 }
 0x356   :  { %922 = vmatmul.mubr.msk.f32.vlgmr.msra.gmra.mxu0 %vm185_vm2, %v998_v54 }
 0x357   :  { %981 = vmatprep.mubr.msk.f32.mxu0 %vm1051_vm0, %v1050_v0  ;;  %952 = vmatpush3.msra.mxu0 %v593_v1 }
 0x358   :  { %953 = vmatprep.subr.mxu0 %v1050_v0 }
 0x359   :  { %954 = vmatpush3.msra.mxu0 %v592_v2 }
 0x35a   :  { %955 = vmatprep.subr.mxu0 %v1050_v0 }
 0x35b   :  { %956 = vmatpush3.msra.mxu0 %v591_v3 }
 0x35c   :  { %957 = vmatprep.subr.mxu0 %v1050_v0 }
 0x35d   :  { %958 = vmatpush3.msra.mxu0 %v590_v4 }
 0x35e   :  { %959 = vmatprep.subr.mxu0 %v1050_v0 }
 0x35f   :  { %960 = vmatpush3.msra.mxu0 %v589_v5 }
 0x360   :  { %961 = vmatprep.subr.mxu0 %v1050_v0 }
 0x361   :  { %962 = vmatpush3.msra.mxu0 %v588_v6 }
 0x362   :  { %963 = vmatprep.subr.mxu0 %v1050_v0 }
 0x363   :  { %964 = vmatpush3.msra.mxu0 %v587_v11 }
 0x364   :  { %965 = vmatprep.subr.mxu0 %v1050_v0 }
 0x365   :  { %966 = vmatpush3.msra.mxu0 %v586_v12 }
 0x366   :  { %967 = vmatprep.subr.mxu0 %v1050_v0 }
 0x367   :  { %968 = vmatpush3.msra.mxu0 %v585_v13 }
 0x368   :  { %969 = vmatprep.subr.mxu0 %v1050_v0 }
 0x369   :  { %970 = vmatpush3.msra.mxu0 %v584_v14 }
 0x36a   :  { %971 = vmatprep.subr.mxu0 %v1050_v0 }
 0x36b   :  { %972 = vmatpush3.msra.mxu0 %v583_v15 }
 0x36c   :  { %973 = vmatprep.subr.mxu0 %v1050_v0 }
 0x36d   :  { %974 = vmatpush3.msra.mxu0 %v582_v16 }
 0x36e   :  { %975 = vmatprep.subr.mxu0 %v1050_v0 }
 0x36f   :  { %976 = vmatpush3.msra.mxu0 %v581_v17 }
 0x370   :  { %977 = vmatprep.subr.mxu0 %v1050_v0 }
 0x371   :  { %978 = vmatpush3.msra.mxu0 %v580_v18 }
 0x372   :  { %979 = vmatprep.subr.mxu0 %v1050_v0 }
 0x373   :  { %980 = vmatpush3.msra.mxu0 %v579_v19 }
 0x416   :  { %v480_v7 = vpop.f32.mrf.mxu0 }
 0x417   :  { %v484_v8 = vadd.f32 %v480_v7, %v1257_v38 }
 0x418   :  { %v923_v9 = vpop.f32.mrf.mxu0 }
 0x419   :  { %999 = vtanh.f32 %v484_v8 }
 0x426   :  { %v1000_v10 = vpop.eup %999 }
 0x427   :  { %949 = vmatmul.mubr.msk.f32.vlgmr.msra.gmra.mxu1 %vm185_vm2, %v1000_v10 }
 0x4e7   :  { %v574_v21 = vpop.f32.mrf.mxu1 }
 0x4e8   :  { %v575_v22 = vadd.f32 %v708_v20, %v574_v21 }
 0x4e9   :  { %v950_v23 = vpop.f32.mrf.mxu1 }
 0x4ea   :  { %1001 = vtanh.f32 %v575_v22 }
 0x4f7   :  { %v1002_v24 = vpop.eup %1001 }
 0x4f8   :  { %982 = vmatmul.mubr.msk.f32.vlgmr.msra.gmra.mxu0 %vm601_vm4, %v1002_v24 }
 0x5b8   :  { %v671_v26 = vpop.f32.mrf.mxu0 }
 0x5b9   :  { %v672_v27 = vadd.f32 %v710_v25, %v671_v26 }
 0x5ba   :  { %v983_v28 = vpop.f32.mrf.mxu0 }
 0x5bb   :  { %678 = vrot.lane.b32.xlu0 %v672_v27, %s1052_s6 }
 0x62d   :  { %v679_v0 = vpop.permute.xlu0 %678 }
 0x62e   :  { %682 = vst.msk [vmem:[#allocation5] sm:$0xff] %vm681_vm5, %v679_v0 }
 0x62f   :  { %1034 = shalt.err (!%p1031_p9)
}
 0x630   :  { %692 = dma.vmem_to_hbm [thread:$0]  %s690_s29, 128, %s1410_s8, [#allocation4]  }
 0x631   :  { %1045 = dma.done.wait [#allocation4], 128  }
 0x632   :  { %1046 = vsyncadd [#allocation4], 4294967168 }
 0x633   :  { %696 = vsyncpa [#allocation3], 1 }
 0x634   :  { %697 = vsyncpa [#allocation4], 1 }

</bundles_post_ra>
